<compile_context>
chip_gen: v7x
topology: tpu7x:2x2x1
jax: 0.10.0
libtpu: 0.0.40
codegen_flags: <defaults>
</compile_context>

<pallas_src>
import functools

import jax
import jax.numpy as jnp
from jax.experimental import pallas as pl
from jax.experimental.pallas import tpu as pltpu


def _round_up(x, m):
    return ((x + m - 1) // m) * m


def _router_kernel(top_k, x_ref, w_ref, b_ref, out_ref, idx_ref):
    # x_ref:  (TILE_N, n_embed)   activations tile (native dtype)
    # w_ref:  (n_embed, E)        bf16 (constant block index -> stays resident)
    # b_ref:  (1, E)              f32
    # out_ref:(TILE_N, E)         f32 router probabilities
    # idx_ref:(TILE_N, top_k)     int32 top-k expert indices (descending logit)
    x = x_ref[...]
    if x.dtype != jnp.bfloat16:
        # VMEM-local cast; hidden under the HBM read of the next tile.
        x = x.astype(jnp.bfloat16)
    w = w_ref[...]

    # --- Linear (MXU, bf16 in / f32 accumulate) ---
    logits = jnp.dot(x, w, preferred_element_type=jnp.float32) + b_ref[...]

    n, e = logits.shape
    col = jax.lax.broadcasted_iota(jnp.int32, (n, e), 1)

    # --- iterative top-k (top_k is a small static int) ---
    work = logits
    sel_mask = jnp.zeros((n, e), dtype=jnp.bool_)
    idx_cols = []
    m0 = None  # top-1 max, reused as the softmax max (it is the global max)
    for k in range(top_k):
        m = jnp.max(work, axis=-1, keepdims=True)
        if k == 0:
            m0 = m
        is_max = work == m
        # lowest index among ties (matches jax.lax.top_k tie-break)
        idx = jnp.min(jnp.where(is_max, col, jnp.int32(e)), axis=-1, keepdims=True)
        sel = col == idx
        sel_mask = jnp.logical_or(sel_mask, sel)
        idx_cols.append(idx)
        if k + 1 < top_k:
            work = jnp.where(sel, -jnp.inf, work)

    idx_ref[...] = jnp.concatenate(idx_cols, axis=-1)

    # --- masked (sparse) softmax over the selected experts only ---
    ex = jnp.where(sel_mask, jnp.exp(logits - m0), jnp.float32(0.0))
    denom = jnp.sum(ex, axis=-1, keepdims=True)          # >= exp(0) = 1
    out_ref[...] = ex / denom                            # exact; hidden under DMA


def topk_router(mh_output, weight, bias, top_k, *, tile_n=None):
    """mh_output: (B, T, n_embed); weight: (num_experts, n_embed); bias: (num_experts,)."""
    B, T, n_embed = mh_output.shape
    num_experts = weight.shape[0]
    N = B * T

    # Free reshape (row-major); NO dtype pass, NO pad over HBM.
    x = mh_output.reshape(N, n_embed)
    x_itemsize = jnp.dtype(x.dtype).itemsize
    # Weight/bias are tiny; cast them host/wrapper-side (negligible traffic).
    w_t = weight.T.astype(jnp.bfloat16)                  # (n_embed, num_experts)
    b2 = bias.reshape(1, num_experts).astype(jnp.float32)

    # Adaptive tile: double-buffered x tile ~16 MiB, capped at 2048 rows.
    if tile_n is None:
        x_budget = 16 * 1024 * 1024
        tile_n = max(8, x_budget // (2 * n_embed * x_itemsize))
        tile_n = min(tile_n, 2048)
    if tile_n >= N:
        tile_n = N                       # single block; "equal full dim" is legal
    else:
        tile_n = max(8, (tile_n // 8) * 8)

    grid = (pl.cdiv(N, tile_n),)

    # Real VMEM footprint: double-buffered x tile + double-buffered outputs
    # + double-buffered (resident) weight/bias, plus a few MiB of headroom.
    x_buf = 2 * tile_n * n_embed * x_itemsize
    out_buf = 2 * tile_n * (num_experts * 4 + top_k * 4)
    w_buf = 2 * (n_embed * num_experts * 2 + num_experts * 4)
    vmem_bytes = max(x_buf + out_buf + w_buf + (4 << 20), 16 << 20)

    kernel = functools.partial(_router_kernel, top_k)

    router_flat, idx_flat = pl.pallas_call(
        kernel,
        out_shape=(
            jax.ShapeDtypeStruct((N, num_experts), jnp.float32),
            jax.ShapeDtypeStruct((N, top_k), jnp.int32),
        ),
        grid=grid,
        in_specs=[
            pl.BlockSpec((tile_n, n_embed), lambda i: (i, 0)),
            # weight / bias: constant block index -> stays resident, no re-DMA
            pl.BlockSpec((n_embed, num_experts), lambda i: (0, 0)),
            pl.BlockSpec((1, num_experts), lambda i: (0, 0)),
        ],
        out_specs=(
            pl.BlockSpec((tile_n, num_experts), lambda i: (i, 0)),
            pl.BlockSpec((tile_n, top_k), lambda i: (i, 0)),
        ),
        compiler_params=pltpu.CompilerParams(
            dimension_semantics=("parallel",),           # shard tokens across TCs
            vmem_limit_bytes=int(vmem_bytes),
        ),
    )(x, w_t, b2)

    return (router_flat.reshape(B, T, num_experts),
            idx_flat.reshape(B, T, top_k))


def _reference(mh_output, weight, bias, top_k):
    # Match the kernel's bf16 rounding of x/w; accumulate in f32 like the MXU.
    x = mh_output.astype(jnp.bfloat16).astype(jnp.float32)
    w = weight.astype(jnp.bfloat16).astype(jnp.float32)
    logits = jnp.einsum("btd,ed->bte", x, w) + bias
    topv, topi = jax.lax.top_k(logits, top_k)
    out = jnp.full_like(logits, -jnp.inf)
    b_idx = jnp.arange(logits.shape[0])[:, None, None]
    t_idx = jnp.arange(logits.shape[1])[None, :, None]
    out = out.at[b_idx, t_idx, topi].set(topv)
    return jax.nn.softmax(out, axis=-1), topi


if __name__ == "__main__":
    B, T, n_embed = 2, 8, 32
    num_experts, top_k = 8, 2

    key = jax.random.PRNGKey(0)
    kx, kw, kb = jax.random.split(key, 3)

    # Deterministic "Linear" parameters (PyTorch-style uniform(-1/sqrt(fan_in), ...))
    bound = 1.0 / (n_embed ** 0.5)
    weight = jax.random.uniform(kw, (num_experts, n_embed), jnp.float32, -bound, bound)
    bias = jax.random.uniform(kb, (num_experts,), jnp.float32, -bound, bound)
    mh_output = jax.random.normal(kx, (B, T, n_embed), jnp.float32)

    router_out, indices = topk_router(mh_output, weight, bias, top_k)
    jax.block_until_ready((router_out, indices))

    # sanity check vs pure-JAX reference (same bf16 rounding of inputs)
    ref_out, ref_idx = _reference(mh_output, weight, bias, top_k)
    assert router_out.shape == (B, T, num_experts)
    assert indices.shape == (B, T, top_k)
    assert jnp.allclose(router_out, ref_out, atol=2e-3), "router probs mismatch"
    assert jnp.array_equal(jnp.sort(indices, axis=-1),
                           jnp.sort(ref_idx.astype(jnp.int32), axis=-1)), "indices mismatch"

    print("KERNEL_OK")
</pallas_src>

<mosaic_0001>
module attributes {stable_mosaic.version = 11 : i64} {
  func.func @_router_kernel(%arg0: i32, %arg1: memref<16x32xf32, #tpu.memory_space<vmem>>, %arg2: memref<32x8xbf16, #tpu.memory_space<vmem>>, %arg3: memref<1x8xf32, #tpu.memory_space<vmem>>, %arg4: memref<16x8xf32, #tpu.memory_space<vmem>>, %arg5: memref<16x2xi32, #tpu.memory_space<vmem>>) attributes {dimension_semantics = [#tpu.dimension_semantics<parallel>], iteration_bounds = array<i64: 1>, scalar_prefetch = 0 : i64, scratch_operands = 0 : i64, tpu.core_type = #tpu.core_type<tc>, window_params = [{transform_indices = @transform_0, window_bounds = array<i64: 16, 32>}, {pipeline_mode = #tpu.pipeline_mode<synchronous>, transform_indices = @transform_1, window_bounds = array<i64: 32, 8>}, {pipeline_mode = #tpu.pipeline_mode<synchronous>, transform_indices = @transform_2, window_bounds = array<i64: 1, 8>}, {transform_indices = @transform_3, window_bounds = array<i64: 16, 8>}, {transform_indices = @transform_4, window_bounds = array<i64: 16, 2>}]} {
    %c0 = arith.constant 0 : index
    %c0_0 = arith.constant 0 : index
    %0 = vector.load %arg1[%c0, %c0_0] : memref<16x32xf32, #tpu.memory_space<vmem>>, vector<16x32xf32>
    %1 = arith.truncf %0 : vector<16x32xf32> to vector<16x32xbf16>
    %c0_1 = arith.constant 0 : index
    %c0_2 = arith.constant 0 : index
    %2 = vector.load %arg2[%c0_1, %c0_2] : memref<32x8xbf16, #tpu.memory_space<vmem>>, vector<32x8xbf16>
    %cst = arith.constant dense<0.000000e+00> : vector<16x8xf32>
    %3 = tpu.matmul %1, %2, %cst {dimension_numbers = #tpu.dot_dimension_numbers<[1], [0], [0], [1], [0, 0, 1, 1], [], []>} : vector<16x32xbf16>, vector<32x8xbf16>, vector<16x8xf32> -> vector<16x8xf32>
    %c0_3 = arith.constant 0 : index
    %c0_4 = arith.constant 0 : index
    %4 = vector.load %arg3[%c0_3, %c0_4] : memref<1x8xf32, #tpu.memory_space<vmem>>, vector<1x8xf32>
    %5 = vector.broadcast %4 : vector<1x8xf32> to vector<16x8xf32>
    %6 = arith.addf %3, %5 : vector<16x8xf32>
    %7 = tpu.iota {dimensions = array<i32: 1>} : vector<16x8xi32>
    %false = arith.constant false
    %8 = vector.broadcast %false : i1 to vector<16x8xi1>
    %cst_5 = arith.constant dense<0xFF800000> : vector<16xf32>
    %9 = vector.multi_reduction <maximumf>, %6, %cst_5 [1] : vector<16x8xf32> to vector<16xf32>
    %10 = vector.shape_cast %9 : vector<16xf32> to vector<16x1xf32>
    %11 = vector.broadcast %10 : vector<16x1xf32> to vector<16x8xf32>
    %12 = arith.cmpf oeq, %6, %11 : vector<16x8xf32>
    %c8_i32 = arith.constant 8 : i32
    %13 = vector.broadcast %c8_i32 : i32 to vector<16x8xi32>
    %14 = arith.select %12, %7, %13 : vector<16x8xi1>, vector<16x8xi32>
    %cst_6 = arith.constant dense<2147483647> : vector<16xi32>
    %15 = vector.multi_reduction <minsi>, %14, %cst_6 [1] : vector<16x8xi32> to vector<16xi32>
    %16 = vector.shape_cast %15 : vector<16xi32> to vector<16x1xi32>
    %17 = vector.broadcast %16 : vector<16x1xi32> to vector<16x8xi32>
    %18 = arith.cmpi eq, %7, %17 : vector<16x8xi32>
    %19 = arith.ori %8, %18 : vector<16x8xi1>
    %cst_7 = arith.constant 0xFF800000 : f32
    %20 = vector.broadcast %cst_7 : f32 to vector<16x8xf32>
    %21 = arith.select %18, %20, %6 : vector<16x8xi1>, vector<16x8xf32>
    %cst_8 = arith.constant dense<0xFF800000> : vector<16xf32>
    %22 = vector.multi_reduction <maximumf>, %21, %cst_8 [1] : vector<16x8xf32> to vector<16xf32>
    %23 = vector.shape_cast %22 : vector<16xf32> to vector<16x1xf32>
    %24 = vector.broadcast %23 : vector<16x1xf32> to vector<16x8xf32>
    %25 = arith.cmpf oeq, %21, %24 : vector<16x8xf32>
    %c8_i32_9 = arith.constant 8 : i32
    %26 = vector.broadcast %c8_i32_9 : i32 to vector<16x8xi32>
    %27 = arith.select %25, %7, %26 : vector<16x8xi1>, vector<16x8xi32>
    %cst_10 = arith.constant dense<2147483647> : vector<16xi32>
    %28 = vector.multi_reduction <minsi>, %27, %cst_10 [1] : vector<16x8xi32> to vector<16xi32>
    %29 = vector.shape_cast %28 : vector<16xi32> to vector<16x1xi32>
    %30 = vector.broadcast %29 : vector<16x1xi32> to vector<16x8xi32>
    %31 = arith.cmpi eq, %7, %30 : vector<16x8xi32>
    %32 = arith.ori %19, %31 : vector<16x8xi1>
    %33 = tpu.concatenate %16, %29 in 1 : vector<16x1xi32>, vector<16x1xi32> -> vector<16x2xi32>
    %c0_11 = arith.constant 0 : index
    %c0_12 = arith.constant 0 : index
    %34 = vector.load %arg5[%c0_11, %c0_12] : memref<16x2xi32, #tpu.memory_space<vmem>>, vector<16x2xi32>
    tpu.vector_store %arg5[%c0_11, %c0_12], %33 {strides = array<i32>} : memref<16x2xi32, #tpu.memory_space<vmem>>, vector<16x2xi32>,
    %35 = vector.broadcast %10 : vector<16x1xf32> to vector<16x8xf32>
    %36 = arith.subf %6, %35 : vector<16x8xf32>
    %37 = math.exp %36 : vector<16x8xf32>
    %cst_13 = arith.constant 0.000000e+00 : f32
    %38 = vector.broadcast %cst_13 : f32 to vector<16x8xf32>
    %39 = arith.select %32, %37, %38 : vector<16x8xi1>, vector<16x8xf32>
    %cst_14 = arith.constant dense<0.000000e+00> : vector<16xf32>
    %40 = vector.multi_reduction <add>, %39, %cst_14 [1] : vector<16x8xf32> to vector<16xf32>
    %41 = vector.shape_cast %40 : vector<16xf32> to vector<16x1xf32>
    %42 = vector.broadcast %41 : vector<16x1xf32> to vector<16x8xf32>
    %43 = arith.divf %39, %42 : vector<16x8xf32>
    %c0_15 = arith.constant 0 : index
    %c0_16 = arith.constant 0 : index
    %44 = vector.load %arg4[%c0_15, %c0_16] : memref<16x8xf32, #tpu.memory_space<vmem>>, vector<16x8xf32>
    tpu.vector_store %arg4[%c0_15, %c0_16], %43 {strides = array<i32>} : memref<16x8xf32, #tpu.memory_space<vmem>>, vector<16x8xf32>,
    return
  }
  func.func @transform_0(%arg0: i32) -> (i32, i32) {
    %c0_i32 = arith.constant 0 : i32
    %c0_i32_0 = arith.constant 0 : i32
    return %arg0, %c0_i32 : i32, i32
  }
  func.func @transform_1(%arg0: i32) -> (i32, i32) {
    %c0_i32 = arith.constant 0 : i32
    %c0_i32_0 = arith.constant 0 : i32
    %c0_i32_1 = arith.constant 0 : i32
    return %c0_i32, %c0_i32_0 : i32, i32
  }
  func.func @transform_2(%arg0: i32) -> (i32, i32) {
    %c0_i32 = arith.constant 0 : i32
    %c0_i32_0 = arith.constant 0 : i32
    %c0_i32_1 = arith.constant 0 : i32
    return %c0_i32, %c0_i32_0 : i32, i32
  }
  func.func @transform_3(%arg0: i32) -> (i32, i32) {
    %c0_i32 = arith.constant 0 : i32
    %c0_i32_0 = arith.constant 0 : i32
    return %arg0, %c0_i32 : i32, i32
  }
  func.func @transform_4(%arg0: i32) -> (i32, i32) {
    %c0_i32 = arith.constant 0 : i32
    %c0_i32_0 = arith.constant 0 : i32
    return %arg0, %c0_i32 : i32, i32
  }
}

</mosaic_0001>

<bundles_post_ra>
// kernel: tpu_custom_call.1
= control target key start
LH: loop header
LB: loop body
LE: loop exit
PB: predicated region body
PF: predicated region fallthrough
CT: control target
= control target key end

     0   :  { %v240_v0 = vmov 0.0   ;;  %vm241_vm0 = vmmov 0   ;;  %vm43_vm1 = vcmask 261120   ;;  %vm90_vm2 = vcmask 64512   ;;  %s352_s1 = inlined_call_operand.vmem [shape: bf16[32,8], index: 1, kind: input, shape index: {}]   ;;  %s353_s0 = inlined_call_operand.vmem [shape: f32[16,32], index: 0, kind: input, shape index: {}]   ;;  %s354_s2 = inlined_call_operand.vmem [shape: f32[1,8], index: 2, kind: input, shape index: {}]   ;;  %s355_s4 = inlined_call_operand.vmem [shape: s32[16,2], index: 4, kind: output, shape index: {1}]   ;;  %s356_s3 = inlined_call_operand.vmem [shape: f32[16,8], index: 3, kind: output, shape index: {0}]  }
   0x1   :  { %220 = vmatprep.subr.bf16.mxu0 %v240_v0  ;;  %v230_v1 = vld [vmem:[%s352_s1] sm:$0xff]   ;;  %224 = vmatprep.mubr.msk.bf16.mxu0 %vm241_vm0, %v240_v0  ;;  %v231_v2 = vld [vmem:[%s352_s1 + $0x8] sm:$0xff]   ;;  %v88_v15 = vlaneseq  ;;  %vm179_vm13 = vcmask 7168   ;;  %vm182_vm14 = vcmask 15360  }
   0x2   :  { %221 = vmatpush3.bf16.msra.mxu0 %v230_v1  ;;  %v17_v3 = vld [vmem:[%s353_s0] sm:$0xff]  ;;  %v18_v4 = vld [vmem:[%s353_s0 + $0x8] sm:$0xff] }
   0x3   :  { %222 = vmatprep.subr.bf16.mxu0 %v240_v0  ;;  %v19_v5 = vpack.c.bf16 %v18_v4, %v17_v3  ;;  %v213_v6 = vld [vmem:[%s354_s2] ss:$0 sm:$0xff]  ;;  %v290_v16 = vand.u32 127, %v88_v15 }
   0x6   :  { %223 = vmatpush3.bf16.msra.mxu0 %v231_v2 }
   0x9   :  { %225 = vmatmul.mubr.msk.bf16.vlgmr.msra.gmra.mrb[0].mxu0 %vm43_vm1, %v19_v5 }
  0xdc   :  { %v81_v7 = vpop.f32.mrb[0].mxu0 }
  0xdd   :  { %v282_v8 = vadd.f32 %v213_v6, %v81_v7  ;;  %v226_v9 = vpop.f32.mrb[1].mxu0 }
  0xde   :  { %v84_v10 = vpop.f32.mrb[2].mxu0 }
  0xdf   :  { %v284_v11 = vadd.f32 %v213_v6, %v84_v10  ;;  %v227_v12 = vpop.f32.mrb[3].mxu0  ;;  %v91_v13 = vsel %vm90_vm2, %v282_v8, -inf }
  0xe0   :  { %92 = vmax.xlane.f32.xlu0 %v91_v13 }
  0xe1   :  { %v94_v14 = vsel %vm90_vm2, %v284_v11, -inf }
  0xe4   :  { %95 = vmax.xlane.f32.xlu0 %v94_v14 }
 0x16d   :  { %v292_v17 = vpop.xlane.xlu0 %92 }
 0x16e   :  { %vm97_vm3 = vcmp.eq.f32.partialorder %v282_v8, %v292_v17  ;;  %v185_v3 = vsub.f32 %v282_v8, %v292_v17 }
 0x16f   :  { %v99_v18 = vsel %vm97_vm3, %v290_v16, 8 }
 0x170   :  { %v101_v19 = vsel %vm90_vm2, %v99_v18, 2147483647  ;;  %v187_v4 = vmul.f32 1.442695, %v185_v3 }
 0x171   :  { %v298_v20 = vpop.xlane.xlu0 %95  ;;  %v103_v21 = vshra.s32 %v101_v19, 16  ;;  %v102_v27 = vand.u32 65535, %v101_v19 }
 0x172   :  { %vm98_vm4 = vcmp.eq.f32.partialorder %v284_v11, %v298_v20  ;;  %v186_v5 = vsub.f32 %v284_v11, %v298_v20  ;;  %232 = vpow2.f32 %v187_v4 }
 0x173   :  { %v100_v22 = vsel %vm98_vm4, %v290_v16, 8  ;;  %v105_v23 = vcvt.s32.f32 %v103_v21  ;;  %v104_v29 = vcvt.s32.f32 %v102_v27 }
 0x174   :  { %v116_v24 = vsel %vm90_vm2, %v100_v22, 2147483647  ;;  %v189_v6 = vmul.f32 1.442695, %v186_v5 }
 0x175   :  { %106 = vmin.xlane.f32.xlu1 %v105_v23  ;;  %v118_v25 = vshra.s32 %v116_v24, 16  ;;  %v117_v30 = vand.u32 65535, %v116_v24 }
 0x176   :  { %234 = vpow2.f32 %v189_v6 }
 0x177   :  { %v120_v26 = vcvt.s32.f32 %v118_v25  ;;  %v119_v33 = vcvt.s32.f32 %v117_v30 }
 0x179   :  { %121 = vmin.xlane.f32.xlu1 %v120_v26 }
 0x202   :  { %v107_v28 = vpop.xlane.xlu1 %106 }
 0x203   :  { %vm108_vm5 = vcmp.eq.f32.partialorder %v105_v23, %v107_v28  ;;  %v113_v35 = vcvt.f32.s32 %v107_v28 }
 0x204   :  { %v109_v31 = vsel %vm108_vm5, %v104_v29, inf }
 0x205   :  { %110 = vmin.xlane.f32.xlu0 %v109_v31  ;;  %v114_v37 = vshll.u32 %v113_v35, 16 }
 0x206   :  { %v122_v32 = vpop.xlane.xlu1 %121 }
 0x207   :  { %vm123_vm6 = vcmp.eq.f32.partialorder %v120_v26, %v122_v32  ;;  %v128_v38 = vcvt.f32.s32 %v122_v32 }
 0x208   :  { %v124_v34 = vsel %vm123_vm6, %v119_v33, inf }
 0x209   :  { %125 = vmin.xlane.f32.xlu1 %v124_v34  ;;  %v129_v42 = vshll.u32 %v128_v38, 16 }
 0x292   :  { %v111_v36 = vpop.xlane.xlu0 %110 }
 0x293   :  { %v112_v39 = vcvt.f32.s32 %v111_v36 }
 0x295   :  { %v115_v40 = vadd.s32 %v114_v37, %v112_v39 }
 0x296   :  { %v126_v41 = vpop.xlane.xlu1 %125 }
 0x297   :  { %v127_v43 = vcvt.f32.s32 %v126_v41  ;;  %vm131_vm7 = vcmp.eq.s32.totalorder %v290_v16, %v115_v40 }
 0x298   :  { %v133_v44 = vsel %vm131_vm7, -inf, %v282_v8  ;;  %v233_v8 = vpop.eup %232 }
 0x299   :  { %v308_v45 = vadd.s32 %v129_v42, %v127_v43  ;;  %v135_v46 = vsel %vm90_vm2, %v133_v44, -inf  ;;  %v235_v23 = vpop.eup %234 }
 0x29a   :  { %136 = vmax.xlane.f32.xlu0 %v135_v46 }
 0x29b   :  { %vm132_vm8 = vcmp.eq.s32.totalorder %v290_v16, %v308_v45 }
 0x29c   :  { %v134_v47 = vsel %vm132_vm8, -inf, %v284_v11 }
 0x29d   :  { %v138_v48 = vsel %vm90_vm2, %v134_v47, -inf }
 0x29e   :  { %139 = vmax.xlane.f32.xlu1 %v138_v48 }
 0x327   :  { %v137_v49 = vpop.xlane.xlu0 %136 }
 0x328   :  { %vm141_vm9 = vcmp.eq.f32.partialorder %v133_v44, %v137_v49 }
 0x329   :  { %v143_v50 = vsel %vm141_vm9, %v290_v16, 8 }
 0x32a   :  { %v145_v51 = vsel %vm90_vm2, %v143_v50, 2147483647 }
 0x32b   :  { %v140_v52 = vpop.xlane.xlu1 %139  ;;  %v147_v53 = vshra.s32 %v145_v51, 16  ;;  %v146_v59 = vand.u32 65535, %v145_v51 }
 0x32c   :  { %vm142_vm10 = vcmp.eq.f32.partialorder %v134_v47, %v140_v52 }
 0x32d   :  { %v144_v54 = vsel %vm142_vm10, %v290_v16, 8  ;;  %v149_v55 = vcvt.s32.f32 %v147_v53  ;;  %v148_v61 = vcvt.s32.f32 %v146_v59 }
 0x32e   :  { %v160_v56 = vsel %vm90_vm2, %v144_v54, 2147483647 }
 0x32f   :  { %150 = vmin.xlane.f32.xlu0 %v149_v55  ;;  %v162_v57 = vshra.s32 %v160_v56, 16  ;;  %v161_v62 = vand.u32 65535, %v160_v56 }
 0x331   :  { %v164_v58 = vcvt.s32.f32 %v162_v57  ;;  %v163_v1 = vcvt.s32.f32 %v161_v62 }
 0x333   :  { %165 = vmin.xlane.f32.xlu1 %v164_v58 }
 0x3bc   :  { %v151_v60 = vpop.xlane.xlu0 %150 }
 0x3bd   :  { %vm152_vm11 = vcmp.eq.f32.partialorder %v149_v55, %v151_v60  ;;  %v157_v7 = vcvt.f32.s32 %v151_v60 }
 0x3be   :  { %v153_v63 = vsel %vm152_vm11, %v148_v61, inf }
 0x3bf   :  { %154 = vmin.xlane.f32.xlu0 %v153_v63  ;;  %v158_v10 = vshll.u32 %v157_v7, 16 }
 0x3c0   :  { %v166_v0 = vpop.xlane.xlu1 %165 }
 0x3c1   :  { %vm167_vm12 = vcmp.eq.f32.partialorder %v164_v58, %v166_v0  ;;  %v172_v12 = vcvt.f32.s32 %v166_v0 }
 0x3c2   :  { %v168_v2 = vsel %vm167_vm12, %v163_v1, inf }
 0x3c3   :  { %169 = vmin.xlane.f32.xlu1 %v168_v2  ;;  %v173_v18 = vshll.u32 %v172_v12, 16 }
 0x44c   :  { %v155_v9 = vpop.xlane.xlu0 %154 }
 0x44d   :  { %v156_v13 = vcvt.f32.s32 %v155_v9 }
 0x44f   :  { %v159_v14 = vadd.s32 %v158_v10, %v156_v13 }
 0x450   :  { %v170_v15 = vpop.xlane.xlu1 %169 }
 0x451   :  { %v180_v19 = vsel %vm179_vm13, %v115_v40, %v159_v14  ;;  %v171_v21 = vcvt.f32.s32 %v170_v15  ;;  %vm175_vm15 = vcmp.eq.s32.totalorder %v290_v16, %v159_v14 }
 0x452   :  { %183 = vst.msk [vmem:[%s355_s4] sm:$0xff] %vm182_vm14, %v180_v19  ;;  %vm177_vm0 = vmor %vm131_vm7, %vm175_vm15 }
 0x453   :  { %v174_v11 = vadd.s32 %v173_v18, %v171_v21  ;;  %v191_v17 = vsel %vm177_vm0, %v233_v8, 0.0 }
 0x454   :  { %v193_v20 = vsel %vm90_vm2, %v191_v17, 0.0 }
 0x455   :  { %v181_v22 = vsel %vm179_vm13, %v308_v45, %v174_v11  ;;  %194 = vadd.xlane.f32.xlu0 %v193_v20  ;;  %vm176_vm1 = vcmp.eq.s32.totalorder %v290_v16, %v174_v11 }
 0x456   :  { %184 = vst.msk [vmem:[%s355_s4 + $0x8] sm:$0xff] %vm182_vm14, %v181_v22  ;;  %vm178_vm3 = vmor %vm132_vm8, %vm176_vm1 }
 0x457   :  { %v192_v24 = vsel %vm178_vm3, %v235_v23, 0.0 }
 0x458   :  { %v196_v25 = vsel %vm90_vm2, %v192_v24, 0.0 }
 0x459   :  { %197 = vadd.xlane.f32.xlu1 %v196_v25 }
 0x4e2   :  { %v195_v26 = vpop.xlane.xlu0 %194 }
 0x4e3   :  { %236 = vrcp.f32 %v195_v26 }
 0x4e6   :  { %v198_v27 = vpop.xlane.xlu1 %197 }
 0x4e7   :  { %238 = vrcp.f32 %v198_v27 }
 0x4ed   :  { %v237_v28 = vpop.eup %236 }
 0x4ee   :  { %v200_v29 = vmul.f32 %v237_v28, %v191_v17 }
 0x4f0   :  { %203 = vst.msk [vmem:[%s356_s3] sm:$0xff] %vm90_vm2, %v200_v29 }
 0x4f1   :  { %v239_v30 = vpop.eup %238 }
 0x4f2   :  { %v202_v31 = vmul.f32 %v239_v30, %v192_v24 }
 0x4f4   :  { %204 = vst.msk [vmem:[%s356_s3 + $0x8] sm:$0xff] %vm90_vm2, %v202_v31 }

</bundles_post_ra>
